<compile_context>
chip_gen: v5e
topology: v5e:2x2
jax: 0.10.0
libtpu: 0.0.40
codegen_flags: <defaults>
</compile_context>

<pallas_src>
import jax
import jax.numpy as jnp
from jax.experimental import pallas as pl
from jax.experimental.pallas import tpu as pltpu

_KP = 128            # lane-padded value / output width (last lane = softmax denominator)


def sat_attention_kernel(mask_ref, val_ref, out_ref):
    """Grid = (query_tile qi [parallel], key_tile ki [arbitrary]).

    mask_ref : (tq, tk)  int8   0/1 sparsity pattern of adj
    val_ref  : (tk, KP)  bf16   [ p*h | 0-pad | p ]   (p = exp(s2 - max(s2)))
    out_ref  : (tq, KP)  f32    resident accumulator across ki
    """
    ki = pl.program_id(1)

    @pl.when(ki == 0)
    def _init():
        out_ref[...] = jnp.zeros_like(out_ref)

    # Single MXU matmul per tile (bf16 operands, f32 accumulation):
    #   cols 0..k-1  accumulate  sum_j mask[i,j] * p[j] * h[j, :]   (numerator)
    #   col  KP-1    accumulates sum_j mask[i,j] * p[j]             (denominator)
    # int8 -> f32 -> bf16 widen: two-step convert lowers on all TPU generations.
    m_bf16 = mask_ref[...].astype(jnp.float32).astype(jnp.bfloat16)
    out_ref[...] += jnp.dot(m_bf16, val_ref[...], preferred_element_type=jnp.float32)

    @pl.when(ki == pl.num_programs(1) - 1)
    def _finalize():
        acc = out_ref[...]
        denom = acc[:, _KP - 1:_KP]                       # (tq, 1)
        # torch.sparse.softmax: rows with no stored entries stay all-zero.
        # reciprocal is evaluated at denom==0 too but its result is discarded.
        inv = jnp.where(denom > 0.0, pl.reciprocal(denom, approx=True), 0.0)
        out_ref[...] = acc * inv


def sat_layer_regular(features, adj, w, b, a1_w, a1_b, a2_w, a2_b,
                      *, tile_q=256, tile_k=512):
    """features: (n, m) f32; adj: (n, n) dense signed orientation matrix (only its
    nonzero pattern matters, as in torch.sparse); w: (m, k); b: (k,);
    a1_w/a2_w: (k, 1); a1_b/a2_b: (1,).  Returns (n, k) f32."""
    n, m = features.shape
    k = w.shape[1]
    assert k <= _KP - 1, "need one free lane for the denominator column"
    assert tile_q % 128 == 0 and tile_k % 128 == 0

    def rup(x, t):
        return ((x + t - 1) // t) * t

    # --- hoisted value / score computation (tiny XLA matmuls, done once) ---
    h = features.astype(jnp.float32) @ w.astype(jnp.float32) + b[None, :]     # (n, k)
    # a_1(h)[i] is a per-row constant under the row softmax -> dropped entirely.
    s2 = h @ a2_w + a2_b                                                      # (n, 1)
    p = jnp.exp(s2 - jnp.max(s2))                                             # (n, 1)
    # TODO(synk): if rows could have all stored s2 entries >> 87 below the global max,
    # fall back to a per-row online-max kernel (this path would underflow those rows).

    # Augmented value matrix: [ p*h | 0-pad | p ] (denominator in the last lane).
    val = jnp.zeros((n, _KP), jnp.float32)
    val = val.at[:, :k].set(p * h)
    val = val.at[:, _KP - 1].set(p[:, 0])

    # --- tile sizes (clamped for small n; qi kept >= 2 tiles when possible for v7x) ---
    tq = min(tile_q, rup(n, 128))
    tk = min(tile_k, rup(n, 128))
    n_pad_q = rup(n, tq)
    n_pad_k = rup(n, tk)

    # In production, precompute/cache this int8 pattern instead of rebuilding per call.
    mask_p = jnp.zeros((n_pad_q, n_pad_k), jnp.int8).at[:n, :n].set(
        (adj != 0).astype(jnp.int8))
    val_p = jnp.zeros((n_pad_k, _KP), jnp.bfloat16).at[:n, :].set(
        val.astype(jnp.bfloat16))

    grid = (n_pad_q // tq, n_pad_k // tk)

    out = pl.pallas_call(
        sat_attention_kernel,
        out_shape=jax.ShapeDtypeStruct((n_pad_q, _KP), jnp.float32),
        grid_spec=pltpu.PrefetchScalarGridSpec(
            num_scalar_prefetch=0,
            grid=grid,
            in_specs=[
                pl.BlockSpec((tq, tk), lambda qi, ki: (qi, ki)),   # adj pattern (int8)
                pl.BlockSpec((tk, _KP), lambda qi, ki: (ki, 0)),   # [p*h | p] values (bf16)
            ],
            out_specs=pl.BlockSpec((tq, _KP), lambda qi, ki: (qi, 0)),
        ),
        compiler_params=pltpu.CompilerParams(
            dimension_semantics=("parallel", "arbitrary"),
        ),
    )(mask_p, val_p)

    return out[:n, :k]


def reference(features, adj, w, b, a1_w, a1_b, a2_w, a2_b):
    """Pure-JAX f32 replica of the PyTorch forward (dense emulation of sparse ops)."""
    h = features @ w + b[None, :]
    s1 = h @ a1_w + a1_b
    s2 = h @ a2_w + a2_b
    scores = s1 + s2.T
    mask = adj != 0
    row_max = jnp.max(jnp.where(mask, scores, -jnp.inf), axis=1, keepdims=True)
    row_max = jnp.where(jnp.isfinite(row_max), row_max, 0.0)
    p = jnp.where(mask, jnp.exp(scores - row_max), 0.0)
    denom = jnp.sum(p, axis=1, keepdims=True)
    attn = jnp.where(denom > 0.0, p / jnp.maximum(denom, 1e-30), 0.0)
    return attn @ h


if __name__ == "__main__":
    n = 300            # number of simplices (exercises padding; grid_qi = 2, grid_ki = 1)
    input_size = 32    # m
    output_size = 32   # k

    key = jax.random.PRNGKey(0)
    (k_feat, k_adj, k_sgn, k_w, k_b,
     k_a1w, k_a1b, k_a2w, k_a2b) = jax.random.split(key, 9)

    features = jax.random.normal(k_feat, (n, input_size), dtype=jnp.float32)

    # Signed orientation matrix: dense stand-in for the sparse adj (only the
    # nonzero pattern affects the forward pass).
    pattern = jax.random.bernoulli(k_adj, 0.3, (n, n))
    signs = jnp.where(jax.random.bernoulli(k_sgn, 0.5, (n, n)), 1.0, -1.0)
    adj = jnp.where(pattern, signs, 0.0).astype(jnp.float32)
    adj = adj.at[7, :].set(0.0)   # one empty row -> exercises the zero-denominator path

    # PyTorch nn.Linear-style init: U(-1/sqrt(fan_in), 1/sqrt(fan_in))
    def lin_init(kw, kb, fan_in, fan_out):
        lim = 1.0 / jnp.sqrt(jnp.float32(fan_in))
        wgt = jax.random.uniform(kw, (fan_in, fan_out), jnp.float32, -lim, lim)
        bias = jax.random.uniform(kb, (fan_out,), jnp.float32, -lim, lim)
        return wgt, bias

    w, b = lin_init(k_w, k_b, input_size, output_size)          # layer: (m, k), (k,)
    a1_w, a1_b = lin_init(k_a1w, k_a1b, output_size, 1)         # a_1:   (k, 1), (1,)
    a2_w, a2_b = lin_init(k_a2w, k_a2b, output_size, 1)         # a_2:   (k, 1), (1,)

    out = sat_layer_regular(features, adj, w, b, a1_w, a1_b, a2_w, a2_b)
    out = jax.block_until_ready(out)

    ref = reference(features, adj, w, b, a1_w, a1_b, a2_w, a2_b)
    assert out.shape == (n, output_size)
    # bf16 MXU operands (p, p*h) + approximate reciprocal in the kernel vs an
    # all-f32 reference -> relaxed tolerance (observed error ~1e-3 absolute).
    assert jnp.allclose(out, ref, rtol=2e-2, atol=2e-2), "mismatch vs reference"

    print("KERNEL_OK")
</pallas_src>

<mosaic_0001>
module attributes {stable_mosaic.version = 11 : i64} {
  func.func @sat_attention_kernel(%arg0: i32, %arg1: i32, %arg2: memref<256x384xi8, #tpu.memory_space<vmem>>, %arg3: memref<384x128xbf16, #tpu.memory_space<vmem>>, %arg4: memref<256x128xf32, #tpu.memory_space<vmem>>) attributes {dimension_semantics = [#tpu.dimension_semantics<parallel>, #tpu.dimension_semantics<arbitrary>], iteration_bounds = array<i64: 2, 1>, scalar_prefetch = 0 : i64, scratch_operands = 0 : i64, tpu.core_type = #tpu.core_type<tc>, window_params = [{transform_indices = @transform_0, window_bounds = array<i64: 256, 384>}, {transform_indices = @transform_1, window_bounds = array<i64: 384, 128>}, {transform_indices = @transform_2, window_bounds = array<i64: 256, 128>}]} {
    %c0_i32 = arith.constant 0 : i32
    %0 = arith.cmpi eq, %arg1, %c0_i32 : i32
    %1 = arith.extui %0 : i1 to i32
    %c0_i32_0 = arith.constant 0 : i32
    %2 = arith.cmpi ne, %1, %c0_i32_0 : i32
    scf.if %2 {
      %cst_10 = arith.constant 0.000000e+00 : f32
      %14 = vector.broadcast %cst_10 : f32 to vector<256x128xf32>
      %c0_11 = arith.constant 0 : index
      %c0_12 = arith.constant 0 : index
      %15 = vector.load %arg4[%c0_11, %c0_12] : memref<256x128xf32, #tpu.memory_space<vmem>>, vector<256x128xf32>
      tpu.vector_store %arg4[%c0_11, %c0_12], %14 {strides = array<i32>} : memref<256x128xf32, #tpu.memory_space<vmem>>, vector<256x128xf32>,
    } else {
    }
    %c0 = arith.constant 0 : index
    %c0_1 = arith.constant 0 : index
    %3 = vector.load %arg2[%c0, %c0_1] : memref<256x384xi8, #tpu.memory_space<vmem>>, vector<256x384xi8>
    %4 = arith.sitofp %3 : vector<256x384xi8> to vector<256x384xf32>
    %5 = arith.truncf %4 : vector<256x384xf32> to vector<256x384xbf16>
    %c0_2 = arith.constant 0 : index
    %c0_3 = arith.constant 0 : index
    %6 = vector.load %arg4[%c0_2, %c0_3] : memref<256x128xf32, #tpu.memory_space<vmem>>, vector<256x128xf32>
    %c0_4 = arith.constant 0 : index
    %c0_5 = arith.constant 0 : index
    %7 = vector.load %arg3[%c0_4, %c0_5] : memref<384x128xbf16, #tpu.memory_space<vmem>>, vector<384x128xbf16>
    %cst = arith.constant dense<0.000000e+00> : vector<256x128xf32>
    %8 = tpu.matmul %5, %7, %cst {dimension_numbers = #tpu.dot_dimension_numbers<[1], [0], [0], [1], [0, 0, 1, 1], [], []>} : vector<256x384xbf16>, vector<384x128xbf16>, vector<256x128xf32> -> vector<256x128xf32>
    %9 = arith.addf %6, %8 : vector<256x128xf32>
    %c0_6 = arith.constant 0 : index
    %c0_7 = arith.constant 0 : index
    %10 = vector.load %arg4[%c0_6, %c0_7] : memref<256x128xf32, #tpu.memory_space<vmem>>, vector<256x128xf32>
    tpu.vector_store %arg4[%c0_6, %c0_7], %9 {strides = array<i32>} : memref<256x128xf32, #tpu.memory_space<vmem>>, vector<256x128xf32>,
    %c0_i32_8 = arith.constant 0 : i32
    %11 = arith.cmpi eq, %arg1, %c0_i32_8 : i32
    %12 = arith.extui %11 : i1 to i32
    %c0_i32_9 = arith.constant 0 : i32
    %13 = arith.cmpi ne, %12, %c0_i32_9 : i32
    scf.if %13 {
      %c0_10 = arith.constant 0 : index
      %c0_11 = arith.constant 0 : index
      %14 = vector.load %arg4[%c0_10, %c0_11] : memref<256x128xf32, #tpu.memory_space<vmem>>, vector<256x128xf32>
      %15 = vector.extract_strided_slice %14 {offsets = [0, 127], sizes = [256, 1], strides = [1, 1]} : vector<256x128xf32> to vector<256x1xf32>
      %cst_12 = arith.constant 0.000000e+00 : f32
      %16 = vector.broadcast %cst_12 : f32 to vector<256x1xf32>
      %17 = arith.cmpf ogt, %15, %16 : vector<256x1xf32>
      %18 = tpu.reciprocal %15 {approx = true} : vector<256x1xf32> -> vector<256x1xf32>
      %cst_13 = arith.constant 0.000000e+00 : f32
      %19 = vector.broadcast %cst_13 : f32 to vector<256x1xf32>
      %20 = arith.select %17, %18, %19 : vector<256x1xi1>, vector<256x1xf32>
      %21 = vector.broadcast %20 : vector<256x1xf32> to vector<256x128xf32>
      %22 = arith.mulf %14, %21 : vector<256x128xf32>
      %c0_14 = arith.constant 0 : index
      %c0_15 = arith.constant 0 : index
      %23 = vector.load %arg4[%c0_14, %c0_15] : memref<256x128xf32, #tpu.memory_space<vmem>>, vector<256x128xf32>
      tpu.vector_store %arg4[%c0_14, %c0_15], %22 {strides = array<i32>} : memref<256x128xf32, #tpu.memory_space<vmem>>, vector<256x128xf32>,
    } else {
    }
    return
  }
  func.func @transform_0(%arg0: i32, %arg1: i32) -> (i32, i32) {
    %c0_i32 = arith.constant 0 : i32
    return %arg0, %arg1 : i32, i32
  }
  func.func @transform_1(%arg0: i32, %arg1: i32) -> (i32, i32) {
    %c0_i32 = arith.constant 0 : i32
    %c0_i32_0 = arith.constant 0 : i32
    return %arg1, %c0_i32 : i32, i32
  }
  func.func @transform_2(%arg0: i32, %arg1: i32) -> (i32, i32) {
    %c0_i32 = arith.constant 0 : i32
    %c0_i32_0 = arith.constant 0 : i32
    return %arg0, %c0_i32 : i32, i32
  }
}

</mosaic_0001>

<bundles_post_ra>
// kernel: tpu_custom_call.1
= control target key start
LH: loop header
LB: loop body
LE: loop exit
PB: predicated region body
PF: predicated region fallthrough
CT: control target
= control target key end

     0   :  { %7 = vsyncpa [#allocation3], 0  ;;  %s2516_s0 = inlined_call_operand.hbm [shape: s8[512,384], index: 0, kind: input, shape index: {}]   ;;  %s2517_s1 = inlined_call_operand.hbm [shape: bf16[384,128], index: 1, kind: input, shape index: {}]   ;;  %s2518_s2 = inlined_call_operand.hbm [shape: f32[512,128], index: 2, kind: output, shape index: {}]  }
   0x1   :  { %9 = vsyncpa [#allocation3 + $0x1], 0 }
   0x2   :  { %10 = vsyncpa [#allocation6], 0 }
   0x3   :  { %11 = vsyncpa [#allocation4], 0 }
   0x4   :  { %13 = vsyncpa [#allocation4 + $0x1], 0  ;;  %s2015_s9 = smov 0   ;;  %s2017_s10 = smov 0  }
   0x5   :  { %s2019_s11 = smov 0   ;;  %s2021_s12 = smov 0  }
   0x6   :  { %s2023_s13 = smov 0   ;;  %s2025_s14 = smov 0  }
   0x7 LB: > { %s1532_s15 = sadd.s32 4294967295, %s1990_s14   ;;  %s1533_s16 = sadd.s32 4294967294, %s1990_s14   ;;  %s1990_s14 = sphi %s2025_s14, %s19_s14   ;;  %s1986_s13 = sphi %s2023_s13, %s2529_s13   ;;  %s1982_s12 = sphi %s2021_s12, %s2528_s12   ;;  %s1978_s11 = sphi %s2019_s11, %s2527_s11   ;;  %s1974_s10 = sphi %s2017_s10, %s2526_s10   ;;  %s1970_s9 = sphi %s2015_s9, %s2525_s9  }
   0x8   : > { %p53_p0 = scmp.ne.s32.totalorder %s1974_s10, %s1970_s9  ;;  %p2049_p1 = scmp.eq.s32.totalorder %s1532_s15, 0 }
   0x9   : > { %p2053_p2 = scmp.eq.s32.totalorder %s1532_s15, 1  ;;  %p109_p3 = scmp.eq.s32.totalorder %s1533_s16, 1 }
   0xa   : > { %p2059_p4 = por %p2049_p1, %p53_p0  ;;  %p1534_p5 = scmp.ge.s32.totalorder %s1990_s14, 1 }
   0xb   : > { %p2064_p6 = por %p109_p3, %p53_p0  ;;  %p116_p7 = scmp.lt.s32.totalorder %s1990_s14, 3 }
   0xc   : > { %s130_s23 = sshll.u32 %s2517_s1, 4  ;;  %s1992_s25 = smov [#allocation5]   ;;  %s131_s23 = int_to_ptr.hbm [resolvable:$true] %s130_s23 }
   0xd   : > { %p2072_p8 = pnand %p1534_p5, %p116_p7  ;;  %s132_s26 = sshll.u32 %s1992_s25, 4  ;;  %s133_s26 = int_to_ptr.vmem [resolvable:$true] %s132_s26 }
   0xe   : > { %p1536_p11 = scmp.ge.s32.totalorder %s1990_s14, 2  ;;  %s1993_s27 = smov 64  }
   0xf   : > { %p1704_p9 = pneg %p2072_p8  ;;  %s1994_s28 = smov 4  }
  0x10   : > { %s31_s29 = sadd.s32 1, %s1986_s13  ;;  %s40_s30 = sadd.s32 1, %s1978_s11 }
  0x11   : > { %p1705_p10 = pnand %p1704_p9, %p2049_p1  ;;  %p33_p12 = scmp.ge.s32.totalorder %s31_s29, 2 }
  0x12   : > { %p47_p13 = scmp.ne.s32.totalorder %s1978_s11, %s1974_s10  ;;  %p48_p0 = scmp.eq.s32.totalorder %s1990_s14, 0 }
  0x13   : > { %1707 = dma.hbm_to_vmem [thread:$0]  (!%p1705_p10), %s131_s23, 3072, %s133_s26, [#allocation6], %s1993_s27, %s1993_s27, %s1994_s28  }
  0x14   : > { %s2531_s29 = smov (%p33_p12, %s31_s29), 0  ;;  %p49_p3 = por %p48_p0, %p47_p13 }
  0x15   : > { %p2090_p5 = por %p2053_p2, %p47_p13  ;;  %s35_s4 = ssub.s32 %s1986_s13, %s2531_s29 }
  0x16   : > { %p1717_p7 = scmp.lt.s32.totalorder %s1990_s14, 2  ;;  %p38_p9 = scmp.eq.s32.totalorder %s35_s4, 0 }
  0x17   : > { %s146_s5 = sand.u32 1, %s1978_s11   ;;  %s1694_s8 = smul.u32 192, %s1986_s13 }
  0x18   : > { %s1693_s6 = smul.u32 192, %s146_s5  ;;  %p1709_p10 = pnand %p1717_p7, %p49_p3 }
  0x19   : > { %s2099_s7 = scalar_select %p38_p9, %s1978_s11, %s40_s30  }
  0x1a   : > { %s150_s15 = scalar_lea.vmem [#allocation2], %s1693_s6  ;;  %s158_s23 = scalar_lea.hbm %s2516_s0, %s1694_s8 }
  0x1b   : > { %s161_s16 = sshll.u32 %s150_s15, 4  ;;  %s159_s18 = sshll.u32 %s158_s23, 4  ;;  %s162_s16 = int_to_ptr.vmem [resolvable:$true] %s161_s16  ;;  %s160_s18 = int_to_ptr.hbm [resolvable:$true] %s159_s18 }
  0x1c   : > { %s147_s25 = scalar_lea.sflag [#allocation3], %s146_s5  ;;  %s1995_s26 = smov 384  }
  0x1d   : > { %s1996_s27 = smov 24   ;;  %173 = sbr.rel (%p2072_p8) target bundleno = 519 (0x207), region = 28 }
  0x1e   : > { %1711 = dma.hbm_to_vmem [thread:$0]  (!%p1709_p10), %s160_s18, 3072, %s162_s16, %s147_s25, %s1995_s26, %s1995_s26, %s1996_s27  }
  0x1f   : > { %s2108_s28 = sand.u32 (!%p2072_p8), 1, %s1974_s10  }
  0x20   : > { %s1695_s30 = smul.u32 (!%p2072_p8), 192, %s2108_s28  ;;  %s176_s4 = scalar_lea.sflag (!%p2072_p8), [#allocation3], %s2108_s28 }
  0x22   : > { %s2112_s6 = scalar_lea.vmem [#allocation2], %s1695_s30 }
  0x23   : > { %1957 = dma.done.wait (%p2059_p4), %s176_s4, 3072  }
  0x24   : > { %1959 = vsyncadd (%p2059_p4), %s176_s4, 4294964224 }
  0x25   : > { %1961 = dma.done.wait (%p2049_p1), [#allocation6], 3072  }
  0x26   : > { %1963 = vsyncadd (%p2049_p1), [#allocation6], 4294964224  ;;  %v1651_v0 = vld [vmem:[#allocation5 + $0x38] sm:$0xff]  ;;  %v1650_v3 = vld [vmem:[#allocation5 + $0x30] sm:$0xff]  ;;  %s1542_s17 = sshll.u32 %s2108_s28, 8  ;;  %s1668_s24 = sshll.u32 %s1982_s12, 8 }
  0x27   : > { %v2122_v1 = vld [vmem:[#allocation5 + $0x78] sm:$0xff]  ;;  %734 = vmatpush.bf16.msra.mxu0 %v1651_v0  ;;  %1669 = vmatpush.bf16.msra.mxu3 %v1651_v0  ;;  %v2128_v4 = vld [vmem:[#allocation5 + $0x70] sm:$0xff]  ;;  %v1649_v6 = vld [vmem:[#allocation5 + $0x28] sm:$0xff]  ;;  %s2338_s19 = scalar_lea.vmem [#allocation7], %s1542_s17  ;;  %s1432_s15 = scalar_lea.hbm %s2518_s2, %s1668_s24 }
  0x28   : > { %v2124_v2 = vld [vmem:[#allocation5 + $0xb8] sm:$0xff]  ;;  %823 = vmatpush.bf16.msra.mxu1 %v2122_v1  ;;  %v2130_v5 = vld [vmem:[#allocation5 + $0xb0] sm:$0xff]  ;;  %v2134_v7 = vld [vmem:[#allocation5 + $0x68] sm:$0xff]  ;;  %s1433_s16 = sshll.u32 %s2338_s19, 4  ;;  %s1435_s21 = sshll.u32 %s1432_s15, 4  ;;  %s1434_s16 = int_to_ptr.vmem [resolvable:$true] %s1433_s16  ;;  %s1436_s21 = int_to_ptr.hbm [resolvable:$true] %s1435_s21 }
  0x29   : > { %912 = vmatpush.bf16.msra.mxu2 %v2124_v2  ;;  %v2136_v8 = vld [vmem:[#allocation5 + $0xa8] sm:$0xff]  ;;  %v1648_v9 = vld [vmem:[#allocation5 + $0x20] sm:$0xff]  ;;  %v1647_v12 = vld [vmem:[#allocation5 + $0x18] sm:$0xff]  ;;  %s1421_s12 = scalar_lea.sflag [#allocation4], %s2108_s28  ;;  %s1918_s22 = sshra.s32 %s1436_s21, 4  ;;  %s1919_s22 = int_to_ptr.hbm [resolvable:$true] %s1918_s22 }
  0x2a   : > { %v2140_v10 = vld [vmem:[#allocation5 + $0x60] sm:$0xff]  ;;  %v2146_v13 = vld [vmem:[#allocation5 + $0x58] sm:$0xff]  ;;  %v1646_v15 = vld [vmem:[#allocation5 + $0x10] sm:$0xff]  ;;  %s1920_s23 = scalar_lea.hbm %s1919_s22, 256  ;;  %s1924_s26 = scalar_lea.hbm %s2518_s2, 512 }
  0x2b   : > { %735 = vmatpush.bf16.msra.mxu0 %v1650_v3  ;;  %1670 = vmatpush.bf16.msra.mxu3 %v1650_v3  ;;  %v2142_v11 = vld [vmem:[#allocation5 + $0xa0] sm:$0xff]  ;;  %v2148_v14 = vld [vmem:[#allocation5 + $0x98] sm:$0xff]  ;;  %v2150_v16 = vld [vmem:[#allocation5 + $0x50] sm:$0xff]  ;;  %p1921_p1 = scmp.ne.s32.totalorder %s1919_s22, %s1920_s23  ;;  %p1925_p8 = scmp.lt.s32.totalorder %s1919_s22, %s2518_s2 }
  0x2c   : > { %824 = vmatpush.bf16.msra.mxu1 %v2128_v4  ;;  %v246_v17 = vld [vmem:[%s2112_s6] sm:$0xff]  ;;  %v264_v18 = vld [vmem:[%s2112_s6 + $0x90] sm:$0xff]  ;;  %v247_v20 = vld [vmem:[%s2112_s6 + $0x8] sm:$0xff]  ;;  %p1926_p12 = scmp.lt.s32.totalorder %s1924_s26, %s1920_s23 }
  0x2d   : > { %913 = vmatpush.bf16.msra.mxu2 %v2130_v5  ;;  %v2156_v19 = vld [vmem:[#allocation5 + $0x90] sm:$0xff]  ;;  %v270_v22 = vunpack.c.0.s8 %v246_v17  ;;  %v273_v23 = vunpack.c.1.s8 %v246_v17  ;;  %v342_v24 = vunpack.c.0.s8 %v264_v18  ;;  %v345_v25 = vunpack.c.1.s8 %v264_v18  ;;  %v1645_v26 = vld [vmem:[#allocation5 + $0x8] sm:$0xff]  ;;  %v1644_v37 = vld [vmem:[#allocation5] sm:$0xff]  ;;  %p1922_p2 = pnand %p1921_p1, %p2090_p5 }
  0x2e   : > { %v248_v21 = vld [vmem:[%s2112_s6 + $0x10] sm:$0xff]  ;;  %v271_v27 = vunpack.c.0.s8 %v247_v20  ;;  %v274_v28 = vunpack.c.1.s8 %v247_v20  ;;  %v2162_v31 = vld [vmem:[#allocation5 + $0x48] sm:$0xff]  ;;  %v2168_v42 = vld [vmem:[#allocation5 + $0x40] sm:$0xff]  ;;  %v276_v48 = vunpack.c.2.s8 %v246_v17  ;;  %v279_v49 = vunpack.c.3.s8 %v246_v17  ;;  %p1927_p13 = por %p1926_p12, %p1925_p8 }
  0x2f   : > { %736 = vmatpush.bf16.msra.mxu0 %v1649_v6  ;;  %1671 = vmatpush.bf16.msra.mxu3 %v1649_v6  ;;  %v272_v29 = vunpack.c.0.s8 %v248_v21  ;;  %v275_v30 = vunpack.c.1.s8 %v248_v21  ;;  %v2164_v32 = vld [vmem:[#allocation5 + $0x88] sm:$0xff]  ;;  %v366_v33 = vcvt.s32.f32 %v270_v22  ;;  %v369_v34 = vcvt.s32.f32 %v273_v23  ;;  %v2170_v43 = vld [vmem:[#allocation5 + $0x80] sm:$0xff]  ;;  %v249_v6 = vld [vmem:[%s2112_s6 + $0x18] sm:$0xff]  ;;  %p1923_p4 = pneg %p1922_p2 }
  0x30   : > { %825 = vmatpush.bf16.msra.mxu1 %v2134_v7  ;;  %v438_v35 = vcvt.s32.f32 %v342_v24  ;;  %v441_v36 = vcvt.s32.f32 %v345_v25  ;;  %v367_v38 = vcvt.s32.f32 %v271_v27  ;;  %v370_v39 = vcvt.s32.f32 %v274_v28 }
  0x31   : > { %914 = vmatpush.bf16.msra.mxu2 %v2136_v8  ;;  %v368_v40 = vcvt.s32.f32 %v272_v29  ;;  %v371_v41 = vcvt.s32.f32 %v275_v30  ;;  %v462_v44 = vpack.c.bf16 %v369_v34, %v366_v33  ;;  %v348_v50 = vunpack.c.2.s8 %v264_v18  ;;  %p1928_p0 = pnand %p1927_p13, %p1923_p4 }
  0x32   : > { %v498_v45 = vpack.c.bf16 %v441_v36, %v438_v35  ;;  %v463_v46 = vpack.c.bf16 %v370_v39, %v367_v38  ;;  %v351_v51 = vunpack.c.3.s8 %v264_v18  ;;  %v277_v52 = vunpack.c.2.s8 %v247_v20 }
  0x33   : > { %737 = vmatpush.bf16.msra.mxu0 %v1648_v9  ;;  %1672 = vmatpush.bf16.msra.mxu3 %v1648_v9  ;;  %v464_v47 = vpack.c.bf16 %v371_v41, %v368_v40  ;;  %v280_v53 = vunpack.c.3.s8 %v247_v20  ;;  %v278_v54 = vunpack.c.2.s8 %v248_v21  ;;  %v281_v55 = vunpack.c.3.s8 %v248_v21  ;;  %v250_v9 = vld [vmem:[%s2112_s6 + $0x20] sm:$0xff] }
  0x34   : > { %826 = vmatpush.bf16.msra.mxu1 %v2140_v10  ;;  %v372_v56 = vcvt.s32.f32 %v276_v48  ;;  %v375_v57 = vcvt.s32.f32 %v279_v49  ;;  %v444_v58 = vcvt.s32.f32 %v348_v50  ;;  %v447_v59 = vcvt.s32.f32 %v351_v51 }
  0x35   : > { %915 = vmatpush.bf16.msra.mxu2 %v2142_v11  ;;  %v373_v60 = vcvt.s32.f32 %v277_v52  ;;  %v376_v61 = vcvt.s32.f32 %v280_v53  ;;  %v374_v62 = vcvt.s32.f32 %v278_v54  ;;  %v377_v63 = vcvt.s32.f32 %v281_v55  ;;  %v265_v54 = vld [vmem:[%s2112_s6 + $0x98] sm:$0xff] }
  0x36   : > { %v465_v0 = vpack.c.bf16 %v375_v57, %v372_v56  ;;  %v285_v17 = vunpack.c.1.s8 %v249_v6  ;;  %v283_v20 = vunpack.c.0.s8 %v250_v9  ;;  %v286_v21 = vunpack.c.1.s8 %v250_v9  ;;  %v253_v55 = vld [vmem:[%s2112_s6 + $0x38] sm:$0xff]  ;;  %v254_v56 = vld [vmem:[%s2112_s6 + $0x40] sm:$0xff] }
  0x37   : > { %738 = vmatpush.bf16.msra.mxu0 %v1647_v12  ;;  %1673 = vmatpush.bf16.msra.mxu3 %v1647_v12  ;;  %v466_v3 = vpack.c.bf16 %v376_v61, %v373_v60  ;;  %v251_v12 = vld [vmem:[%s2112_s6 + $0x28] sm:$0xff]  ;;  %v291_v36 = vunpack.c.3.s8 %v249_v6  ;;  %v289_v39 = vunpack.c.2.s8 %v250_v9  ;;  %v292_v40 = vunpack.c.3.s8 %v250_v9 }
  0x38   : > { %827 = vmatpush.bf16.msra.mxu1 %v2146_v13  ;;  %v284_v22 = vunpack.c.0.s8 %v251_v12  ;;  %v287_v23 = vunpack.c.1.s8 %v251_v12  ;;  %v381_v24 = vcvt.s32.f32 %v285_v17  ;;  %v379_v27 = vcvt.s32.f32 %v283_v20 }
  0x39   : > { %916 = vmatpush.bf16.msra.mxu2 %v2148_v14  ;;  %v382_v28 = vcvt.s32.f32 %v286_v21  ;;  %v290_v41 = vunpack.c.2.s8 %v251_v12  ;;  %v388_v48 = vcvt.s32.f32 %v292_v40  ;;  %v295_v60 = vunpack.c.0.s8 %v253_v55 }
  0x3a   : > { %v380_v29 = vcvt.s32.f32 %v284_v22  ;;  %v383_v30 = vcvt.s32.f32 %v287_v23  ;;  %v298_v61 = vunpack.c.1.s8 %v253_v55  ;;  %v352_v20 = vunpack.c.3.s8 %v265_v54 }
  0x3b   : > { %739 = vmatpush.bf16.msra.mxu0 %v1646_v15  ;;  %1674 = vmatpush.bf16.msra.mxu3 %v1646_v15  ;;  %v282_v15 = vunpack.c.0.s8 %v249_v6  ;;  %v469_v34 = vpack.c.bf16 %v382_v28, %v379_v27  ;;  %v301_v21 = vunpack.c.2.s8 %v253_v55  ;;  %v304_v22 = vunpack.c.3.s8 %v253_v55 }
  0x3c   : > { %828 = vmatpush.bf16.msra.mxu1 %v2150_v16  ;;  %v470_v35 = vpack.c.bf16 %v383_v30, %v380_v29  ;;  %v302_v23 = vunpack.c.2.s8 %v254_v56 }
  0x3d   : > { %917 = vmatpush.bf16.msra.mxu2 %v2156_v19  ;;  %v397_v27 = vcvt.s32.f32 %v301_v21  ;;  %v400_v28 = vcvt.s32.f32 %v304_v22  ;;  %v1997_v21 = vmov 127  }
  0x3e   : > { %v398_v29 = vcvt.s32.f32 %v302_v23  ;;  %1777 = vset.pattern.permute.xlu0 %v1997_v21  ;;  %1778 = vset.pattern.permute.xlu1 %v1997_v21 }
  0x3f   : > { %740 = vmatpush.bf16.msra.mxu0 %v1645_v26  ;;  %1675 = vmatpush.bf16.msra.mxu3 %v1645_v26 }
  0x40   : > { %829 = vmatpush.bf16.msra.mxu1 %v2162_v31  ;;  %1779 = vset.pattern.permute.xlu2 %v1997_v21 }
  0x41   : > { %918 = vmatpush.bf16.msra.mxu2 %v2164_v32 }
  0x43   : > { %741 = vmatpush.bf16.msra.mxu0 %v1644_v37  ;;  %1676 = vmatpush.bf16.msra.mxu3 %v1644_v37 }
  0x44   : > { %830 = vmatpush.bf16.msra.mxu1 %v2168_v42 }
  0x45   : > { %919 = vmatpush.bf16.msra.mxu2 %v2170_v43 }
  0x46   : > { %742 = vmatmul.bf16.vlgmr.msra.gmra.mxu0 %v462_v44  ;;  %802 = vmatmul.bf16.vlgmr.msra.gmra.mxu3 %v498_v45 }
  0x47   : > { %1677 = vmatpush.bf16.msrb.mxu3 %v2122_v1  ;;  %831 = vmatmul.bf16.vlgmr.msra.gmra.mxu1 %v463_v46  ;;  %v501_v1 = vpack.c.bf16 %v447_v59, %v444_v58  ;;  %v343_v59 = vunpack.c.0.s8 %v265_v54 }
  0x48   : > { %920 = vmatmul.bf16.vlgmr.msra.gmra.mxu2 %v464_v47  ;;  %v385_v47 = vcvt.s32.f32 %v289_v39 }
  0x4a   : > { %v472_v52 = vpack.c.bf16 %v388_v48, %v385_v47 }
  0x4b   : > { %1678 = vmatpush.bf16.msrb.mxu3 %v2128_v4  ;;  %v467_v4 = vpack.c.bf16 %v377_v63, %v374_v62  ;;  %v296_v62 = vunpack.c.0.s8 %v254_v56  ;;  %v299_v63 = vunpack.c.1.s8 %v254_v56 }
  0x4d   : > { %v395_v9 = vcvt.s32.f32 %v299_v63 }
  0x4f   : > { %1679 = vmatpush.bf16.msrb.mxu3 %v2134_v7  ;;  %v267_v7 = vld [vmem:[%s2112_s6 + $0xa8] sm:$0xff] }
  0x50   : > { %v354_v18 = vunpack.c.0.s8 %v267_v7  ;;  %v360_v37 = vunpack.c.2.s8 %v267_v7  ;;  %v363_v38 = vunpack.c.3.s8 %v267_v7 }
  0x52   : > { %v450_v25 = vcvt.s32.f32 %v354_v18  ;;  %v456_v45 = vcvt.s32.f32 %v360_v37  ;;  %v459_v46 = vcvt.s32.f32 %v363_v38  ;;  %v256_v37 = vld [vmem:[%s2112_s6 + $0x50] sm:$0xff]  ;;  %v257_v38 = vld [vmem:[%s2112_s6 + $0x58] sm:$0xff] }
  0x53   : > { %1680 = vmatpush.bf16.msrb.mxu3 %v2140_v10  ;;  %v357_v10 = vunpack.c.1.s8 %v267_v7  ;;  %v392_v7 = vcvt.s32.f32 %v296_v62  ;;  %v314_v62 = vunpack.c.2.s8 %v257_v38  ;;  %v317_v63 = vunpack.c.3.s8 %v257_v38 }
  0x54   : > { %v507_v51 = vpack.c.bf16 %v459_v46, %v456_v45  ;;  %v308_v45 = vunpack.c.0.s8 %v257_v38  ;;  %v311_v46 = vunpack.c.1.s8 %v257_v38 }
  0x55   : > { %v453_v26 = vcvt.s32.f32 %v357_v10  ;;  %v476_v17 = vpack.c.bf16 %v395_v9, %v392_v7  ;;  %v349_v10 = vunpack.c.2.s8 %v265_v54  ;;  %v410_v7 = vcvt.s32.f32 %v314_v62 }
  0x56   : > { %747 = vmatmul.bf16.gmra.mxu0 %v465_v0  ;;  %807 = vmatmul.bf16.gmra.mxu3 %v501_v1  ;;  %v439_v1 = vcvt.s32.f32 %v343_v59  ;;  %v413_v9 = vcvt.s32.f32 %v317_v63 }
  0x57   : > { %1681 = vmatpush.bf16.msrb.mxu3 %v2146_v13  ;;  %836 = vmatmul.bf16.gmra.mxu1 %v466_v3  ;;  %v378_v13 = vcvt.s32.f32 %v282_v15  ;;  %v504_v33 = vpack.c.bf16 %v453_v26, %v450_v25  ;;  %v448_v26 = vcvt.s32.f32 %v352_v20  ;;  %v260_v20 = vld [vmem:[%s2112_s6 + $0x70] sm:$0xff] }
  0x58   : > { %925 = vmatmul.bf16.gmra.mxu2 %v467_v4  ;;  %v391_v4 = vcvt.s32.f32 %v295_v60  ;;  %v313_v60 = vunpack.c.2.s8 %v256_v37 }
  0x5b   : > { %1682 = vmatpush.bf16.msrb.mxu3 %v2150_v16  ;;  %v468_v16 = vpack.c.bf16 %v381_v24, %v378_v13  ;;  %v305_v13 = vunpack.c.3.s8 %v254_v56 }
  0x5d   : > { %v401_v30 = vcvt.s32.f32 %v305_v13 }
  0x5f   : > { %1683 = vmatpush.bf16.msrb.mxu3 %v2162_v31  ;;  %v288_v31 = vunpack.c.2.s8 %v249_v6  ;;  %v394_v6 = vcvt.s32.f32 %v298_v61  ;;  %v316_v61 = vunpack.c.3.s8 %v256_v37 }
  0x61   : > { %v384_v44 = vcvt.s32.f32 %v288_v31  ;;  %v475_v15 = vpack.c.bf16 %v394_v6, %v391_v4  ;;  %v255_v31 = vld [vmem:[%s2112_s6 + $0x48] sm:$0xff]  ;;  %v409_v4 = vcvt.s32.f32 %v313_v60  ;;  %v412_v6 = vcvt.s32.f32 %v316_v61 }
  0x62   : > { %v306_v39 = vunpack.c.0.s8 %v255_v31  ;;  %v309_v40 = vunpack.c.1.s8 %v255_v31 }
  0x63   : > { %1684 = vmatpush.bf16.msrb.mxu3 %v2168_v42  ;;  %v293_v42 = vunpack.c.3.s8 %v251_v12 }
  0x64   : > { %v402_v47 = vcvt.s32.f32 %v306_v39  ;;  %v405_v48 = vcvt.s32.f32 %v309_v40 }
  0x65   : > { %v389_v49 = vcvt.s32.f32 %v293_v42 }
  0x66   : > { %752 = vmatmul.bf16.gmra.mxu0 %v468_v16  ;;  %812 = vmatmul.bf16.gmra.mxu3 %v504_v33 }
  0x67   : > { %1685 = vmatpush.bf16.msra.mxu3 %v2124_v2  ;;  %841 = vmatmul.bf16.gmra.mxu1 %v469_v34  ;;  %v387_v2 = vcvt.s32.f32 %v291_v36  ;;  %v478_v34 = vpack.c.bf16 %v400_v28, %v397_v27  ;;  %v268_v36 = vld [vmem:[%s2112_s6 + $0xb0] sm:$0xff]  ;;  %v323_v27 = vunpack.c.1.s8 %v260_v20 }
  0x68   : > { %930 = vmatmul.bf16.gmra.mxu2 %v470_v35  ;;  %v479_v35 = vpack.c.bf16 %v401_v30, %v398_v29  ;;  %v358_v42 = vunpack.c.1.s8 %v268_v36  ;;  %v361_v59 = vunpack.c.2.s8 %v268_v36 }
  0x69   : > { %v471_v50 = vpack.c.bf16 %v387_v2, %v384_v44  ;;  %v307_v44 = vunpack.c.0.s8 %v256_v37  ;;  %v310_v2 = vunpack.c.1.s8 %v256_v37 }
  0x6b   : > { %1686 = vmatpush.bf16.msra.mxu3 %v2130_v5  ;;  %v386_v5 = vcvt.s32.f32 %v290_v41  ;;  %v355_v41 = vunpack.c.0.s8 %v268_v36 }
  0x6d   : > { %v473_v53 = vpack.c.bf16 %v389_v49, %v386_v5  ;;  %v451_v5 = vcvt.s32.f32 %v355_v41  ;;  %v454_v49 = vcvt.s32.f32 %v358_v42 }
  0x6f   : > { %1687 = vmatpush.bf16.msra.mxu3 %v2136_v8  ;;  %v252_v8 = vld [vmem:[%s2112_s6 + $0x30] sm:$0xff] }
  0x70   : > { %v294_v57 = vunpack.c.0.s8 %v252_v8  ;;  %v297_v58 = vunpack.c.1.s8 %v252_v8  ;;  %v300_v18 = vunpack.c.2.s8 %v252_v8 }
  0x72   : > { %v393_v0 = vcvt.s32.f32 %v297_v58  ;;  %v396_v24 = vcvt.s32.f32 %v300_v18  ;;  %v315_v58 = vunpack.c.3.s8 %v255_v31  ;;  %v258_v18 = vld [vmem:[%s2112_s6 + $0x60] sm:$0xff] }
  0x73   : > { %1688 = vmatpush.bf16.msra.mxu3 %v2142_v11  ;;  %v346_v11 = vunpack.c.1.s8 %v265_v54  ;;  %v505_v54 = vpack.c.bf16 %v454_v49, %v451_v5  ;;  %v318_v22 = vunpack.c.0.s8 %v258_v18  ;;  %v321_v23 = vunpack.c.1.s8 %v258_v18 }
  0x75   : > { %v442_v3 = vcvt.s32.f32 %v346_v11  ;;  %v364_v11 = vunpack.c.3.s8 %v268_v36  ;;  %v414_v28 = vcvt.s32.f32 %v318_v22  ;;  %v417_v29 = vcvt.s32.f32 %v321_v23 }
  0x76   : > { %757 = vmatmul.bf16.gmra.mxu0 %v471_v50  ;;  %817 = vmatmul.bf16.gmra.mxu3 %v507_v51  ;;  %v403_v50 = vcvt.s32.f32 %v307_v44  ;;  %v406_v51 = vcvt.s32.f32 %v310_v2  ;;  %v324_v2 = vunpack.c.2.s8 %v258_v18 }
  0x77   : > { %1689 = vmatpush.bf16.msra.mxu3 %v2148_v14  ;;  %846 = vmatmul.bf16.gmra.mxu1 %v472_v52  ;;  %v390_v14 = vcvt.s32.f32 %v294_v57  ;;  %v499_v12 = vpack.c.bf16 %v442_v3, %v439_v1  ;;  %v404_v52 = vcvt.s32.f32 %v308_v45  ;;  %v312_v57 = vunpack.c.2.s8 %v255_v31 }
  0x78   : > { %935 = vmatmul.bf16.gmra.mxu2 %v473_v53  ;;  %v407_v53 = vcvt.s32.f32 %v311_v46  ;;  %v481_v55 = vpack.c.bf16 %v406_v51, %v403_v50  ;;  %v457_v1 = vcvt.s32.f32 %v361_v59  ;;  %v460_v3 = vcvt.s32.f32 %v364_v11 }
  0x79   : > { %v419_v31 = vcvt.s32.f32 %v323_v27  ;;  %v486_v36 = vpack.c.bf16 %v417_v29, %v414_v28  ;;  %v327_v46 = vunpack.c.3.s8 %v258_v18  ;;  %v2223_v18 = vld [vmem:[%s2112_s6 + $0xb8] sm:$0xff] }
  0x7a   : > { %v482_v56 = vpack.c.bf16 %v407_v53, %v404_v52  ;;  %v326_v52 = vunpack.c.2.s8 %v260_v20  ;;  %v329_v53 = vunpack.c.3.s8 %v260_v20 }
  0x7b   : > { %1690 = vmatpush.bf16.msra.mxu3 %v2156_v19  ;;  %v474_v19 = vpack.c.bf16 %v393_v0, %v390_v14  ;;  %v408_v14 = vcvt.s32.f32 %v312_v57  ;;  %v411_v0 = vcvt.s32.f32 %v315_v58 }
  0x7c   : > { %v422_v11 = vcvt.s32.f32 %v326_v52  ;;  %v425_v60 = vcvt.s32.f32 %v329_v53 }
  0x7f   : > { %1691 = vmatpush.bf16.msra.mxu3 %v2164_v32  ;;  %v303_v32 = vunpack.c.3.s8 %v252_v8  ;;  %v480_v8 = vpack.c.bf16 %v405_v48, %v402_v47 }
  0x81   : > { %v399_v25 = vcvt.s32.f32 %v303_v32  ;;  %v266_v32 = vld [vmem:[%s2112_s6 + $0xa0] sm:$0xff] }
  0x82   : > { %v344_v13 = vunpack.c.0.s8 %v266_v32  ;;  %v350_v48 = vunpack.c.2.s8 %v266_v32  ;;  %v353_v5 = vunpack.c.3.s8 %v266_v32 }
  0x83   : > { %1692 = vmatpush.bf16.msra.mxu3 %v2170_v43  ;;  %v445_v43 = vcvt.s32.f32 %v349_v10  ;;  %v477_v16 = vpack.c.bf16 %v399_v25, %v396_v24  ;;  %v259_v10 = vld [vmem:[%s2112_s6 + $0x68] sm:$0xff]  ;;  %v347_v24 = vunpack.c.1.s8 %v266_v32 }
  0x84   : > { %v319_v25 = vunpack.c.0.s8 %v259_v10  ;;  %v440_v30 = vcvt.s32.f32 %v344_v13  ;;  %v325_v47 = vunpack.c.2.s8 %v259_v10  ;;  %v328_v51 = vunpack.c.3.s8 %v259_v10  ;;  %v2227_v32 = vld [vmem:[%s2112_s6 + $0x88] sm:$0xff] }
  0x85   : > { %v502_v33 = vpack.c.bf16 %v448_v26, %v445_v43  ;;  %v322_v43 = vunpack.c.1.s8 %v259_v10  ;;  %v320_v26 = vunpack.c.0.s8 %v260_v20  ;;  %v446_v57 = vcvt.s32.f32 %v350_v48 }
  0x86   : > { %762 = vmatmul.bf16.gmra.mxu0 %v474_v19  ;;  %891 = vmatmul.bf16.vlgmr.msrb.gmra.mxu3 %v499_v12  ;;  %v483_v19 = vpack.c.bf16 %v411_v0, %v408_v14  ;;  %v508_v12 = vpack.c.bf16 %v460_v3, %v457_v1  ;;  %v449_v58 = vcvt.s32.f32 %v353_v5  ;;  %v424_v59 = vcvt.s32.f32 %v328_v51 }
  0x87   : > { %851 = vmatmul.bf16.gmra.mxu1 %v475_v15  ;;  %v484_v15 = vpack.c.bf16 %v412_v6, %v409_v4  ;;  %v491_v6 = vpack.c.bf16 %v425_v60, %v422_v11  ;;  %v356_v13 = vunpack.c.0.s8 %v2223_v18  ;;  %v332_v27 = vunpack.c.0.s8 %v2227_v32 }
  0x88   : > { %940 = vmatmul.bf16.gmra.mxu2 %v476_v17  ;;  %v485_v17 = vpack.c.bf16 %v413_v9, %v410_v7  ;;  %v503_v0 = vpack.c.bf16 %v449_v58, %v446_v57  ;;  %v335_v28 = vunpack.c.1.s8 %v2227_v32  ;;  %v362_v58 = vunpack.c.2.s8 %v2223_v18 }
  0x96   : > { %767 = vmatmul.bf16.gmra.mxu0 %v477_v16  ;;  %896 = vmatmul.bf16.gmra.mxu3 %v502_v33  ;;  %v443_v16 = vcvt.s32.f32 %v347_v24  ;;  %v415_v33 = vcvt.s32.f32 %v319_v25  ;;  %v359_v24 = vunpack.c.1.s8 %v2223_v18 }
  0x97   : > { %856 = vmatmul.bf16.gmra.mxu1 %v478_v34  ;;  %v418_v34 = vcvt.s32.f32 %v322_v43 }
  0x98   : > { %945 = vmatmul.bf16.gmra.mxu2 %v479_v35  ;;  %v416_v35 = vcvt.s32.f32 %v320_v26  ;;  %v500_v37 = vpack.c.bf16 %v443_v16, %v440_v30 }
  0x99   : > { %v487_v39 = vpack.c.bf16 %v418_v34, %v415_v33 }
  0x9a   : > { %v488_v40 = vpack.c.bf16 %v419_v31, %v416_v35  ;;  %v452_v35 = vcvt.s32.f32 %v356_v13  ;;  %v455_v31 = vcvt.s32.f32 %v359_v24 }
  0xa6   : > { %772 = vmatmul.bf16.gmra.mxu0 %v480_v8  ;;  %901 = vmatmul.bf16.gmra.mxu3 %v505_v54  ;;  %v420_v54 = vcvt.s32.f32 %v324_v2 }
  0xa7   : > { %861 = vmatmul.bf16.gmra.mxu1 %v481_v55  ;;  %v423_v55 = vcvt.s32.f32 %v327_v46 }
  0xa8   : > { %950 = vmatmul.bf16.gmra.mxu2 %v482_v56  ;;  %v421_v56 = vcvt.s32.f32 %v325_v47 }
  0xa9   : > { %v489_v14 = vpack.c.bf16 %v423_v55, %v420_v54 }
  0xaa   : > { %v490_v4 = vpack.c.bf16 %v424_v59, %v421_v56  ;;  %v365_v59 = vunpack.c.3.s8 %v2223_v18 }
  0xb6   : > { %777 = vmatmul.bf16.gmra.mxu0 %v483_v19  ;;  %906 = vmatmul.bf16.gmra.mxu3 %v508_v12  ;;  %v2217_v12 = vld [vmem:[%s2112_s6 + $0x78] sm:$0xff] }
  0xb7   : > { %866 = vmatmul.bf16.gmra.mxu1 %v484_v15  ;;  %v330_v20 = vunpack.c.0.s8 %v2217_v12  ;;  %v333_v21 = vunpack.c.1.s8 %v2217_v12  ;;  %v336_v54 = vunpack.c.2.s8 %v2217_v12  ;;  %v339_v55 = vunpack.c.3.s8 %v2217_v12 }
  0xb8   : > { %955 = vmatmul.bf16.gmra.mxu2 %v485_v17  ;;  %v2220_v17 = vld [vmem:[%s2112_s6 + $0x80] sm:$0xff] }
  0xb9   : > { %v331_v23 = vunpack.c.0.s8 %v2220_v17  ;;  %v334_v26 = vunpack.c.1.s8 %v2220_v17  ;;  %v426_v16 = vcvt.s32.f32 %v330_v20  ;;  %v429_v33 = vcvt.s32.f32 %v333_v21 }
  0xba   : > { %v337_v57 = vunpack.c.2.s8 %v2220_v17 }
  0xbb   : > { %v427_v34 = vcvt.s32.f32 %v331_v23  ;;  %v492_v2 = vpack.c.bf16 %v429_v33, %v426_v16 }
  0xc3   : > { %v743_v38 = vpop.f32.mrf.mxu0 }
  0xc4   : > { %v832_v41 = vpop.f32.mrf.mxu1 }
  0xc5   : > { %v833_v42 = vadd.f32 %v832_v41, %v743_v38  ;;  %v428_v38 = vcvt.s32.f32 %v332_v27 }
  0xc6   : > { %782 = vmatmul.bf16.gmra.mxu0 %v486_v36  ;;  %980 = vmatmul.bf16.vlgmr.msra.gmra.mxu3 %v500_v37  ;;  %v430_v37 = vcvt.s32.f32 %v334_v26 }
  0xc7   : > { %871 = vmatmul.bf16.gmra.mxu1 %v487_v39  ;;  %v431_v39 = vcvt.s32.f32 %v335_v28 }
  0xc8   : > { %960 = vmatmul.bf16.gmra.mxu2 %v488_v40  ;;  %v493_v48 = vpack.c.bf16 %v430_v37, %v427_v34 }
  0xc9   : > { %v2206_v44 = vpop.f32.mrf.mxu3  ;;  %v494_v5 = vpack.c.bf16 %v431_v39, %v428_v38 }
  0xcb   : > { %v921_v45 = vpop.f32.mrf.mxu2  ;;  %v745_v50 = vpop.f32.mrf.mxu0 }
  0xcc   : > { %v2208_v49 = vadd.f32 %v921_v45, %v833_v42  ;;  %v834_v8 = vpop.f32.mrf.mxu1  ;;  %v506_v45 = vpack.c.bf16 %v455_v31, %v452_v35 }
  0xcd   : > { %v835_v61 = vadd.f32 %v834_v8, %v745_v50 }
  0xce   : > { %1780 = vrcp.f32 %v2208_v49  ;;  %vm1100_vm0 = vcmp.gt.f32.partialorder %v2208_v49, 0.0 }
  0xd1   : > { %v2211_v62 = vpop.f32.mrf.mxu3 }
  0xd3   : > { %v923_v63 = vpop.f32.mrf.mxu2  ;;  %v748_v3 = vpop.f32.mrf.mxu0 }
  0xd4   : > { %v2213_v1 = vadd.f32 %v923_v63, %v835_v61  ;;  %v837_v7 = vpop.f32.mrf.mxu1  ;;  %v1781_v9 = vpop.eup %1780  ;;  %v340_v61 = vunpack.c.3.s8 %v2220_v17  ;;  %v338_v63 = vunpack.c.2.s8 %v2227_v32 }
  0xd5   : > { %v1164_v19 = vsel %vm1100_vm0, %v1781_v9, 0.0  ;;  %v838_v15 = vadd.f32 %v837_v7, %v748_v3  ;;  %v433_v7 = vcvt.s32.f32 %v337_v57  ;;  %v458_v9 = vcvt.s32.f32 %v362_v58 }
  0xd6   : > { %787 = vmatmul.bf16.gmra.mxu0 %v489_v14  ;;  %985 = vmatmul.bf16.gmra.mxu3 %v503_v0  ;;  %1782 = vrcp.f32 %v2213_v1  ;;  %vm1101_vm1 = vcmp.gt.f32.partialorder %v2213_v1, 0.0  ;;  %v341_v14 = vunpack.c.3.s8 %v2227_v32  ;;  %v434_v18 = vcvt.s32.f32 %v338_v63 }
  0xd7   : > { %876 = vmatmul.bf16.gmra.mxu1 %v490_v4  ;;  %1198 = vperm.xlu0 %1777, %v1164_v19   ;;  %v432_v4 = vcvt.s32.f32 %v336_v54  ;;  %v461_v19 = vcvt.s32.f32 %v365_v59 }
  0xd8   : > { %965 = vmatmul.bf16.gmra.mxu2 %v491_v6  ;;  %v435_v6 = vcvt.s32.f32 %v339_v55  ;;  %v437_v20 = vcvt.s32.f32 %v341_v14 }
  0xd9   : > { %v2229_v10 = vpop.f32.mrf.mxu3  ;;  %v509_v23 = vpack.c.bf16 %v461_v19, %v458_v9 }
  0xda   : > { %v497_v26 = vpack.c.bf16 %v437_v20, %v434_v18 }
  0xdb   : > { %v926_v22 = vpop.f32.mrf.mxu2  ;;  %v750_v43 = vpop.f32.mrf.mxu0 }
  0xdc   : > { %v2236_v25 = vadd.f32 %v926_v22, %v838_v15  ;;  %v839_v29 = vpop.f32.mrf.mxu1  ;;  %v1783_v30 = vpop.eup %1782  ;;  %v436_v15 = vcvt.s32.f32 %v340_v61  ;;  %v495_v22 = vpack.c.bf16 %v435_v6, %v432_v4 }
  0xdd   : > { %v1165_v36 = vsel %vm1101_vm1, %v1783_v30, 0.0  ;;  %v840_v40 = vadd.f32 %v839_v29, %v750_v43 }
  0xde   : > { %1784 = vrcp.f32 %v2236_v25  ;;  %vm1102_vm2 = vcmp.gt.f32.partialorder %v2236_v25, 0.0  ;;  %v496_v43 = vpack.c.bf16 %v436_v15, %v433_v7 }
  0xdf   : > { %1203 = vperm.xlu0 %1777, %v1165_v36  }
  0xe1   : > { %v2243_v41 = vpop.f32.mrf.mxu3 }
  0xe3   : > { %v928_v42 = vpop.f32.mrf.mxu2  ;;  %v753_v47 = vpop.f32.mrf.mxu0 }
  0xe4   : > { %v2245_v46 = vadd.f32 %v928_v42, %v840_v40  ;;  %v842_v50 = vpop.f32.mrf.mxu1  ;;  %v1785_v51 = vpop.eup %1784 }
  0xe5   : > { %v1166_v52 = vsel %vm1102_vm2, %v1785_v51, 0.0  ;;  %v843_v53 = vadd.f32 %v842_v50, %v753_v47 }
  0xe6   : > { %792 = vmatmul.bf16.gmra.mxu0 %v492_v2  ;;  %990 = vmatmul.bf16.gmra.mxu3 %v506_v45  ;;  %1786 = vrcp.f32 %v2245_v46  ;;  %vm1103_vm3 = vcmp.gt.f32.partialorder %v2245_v46, 0.0 }
  0xe7   : > { %881 = vmatmul.bf16.gmra.mxu1 %v493_v48  ;;  %1208 = vperm.xlu1 %1778, %v1166_v52  }
  0xe8   : > { %970 = vmatmul.bf16.gmra.mxu2 %v494_v5 }
  0xe9   : > { %v2249_v8 = vpop.f32.mrf.mxu3 }
  0xeb   : > { %v931_v56 = vpop.f32.mrf.mxu2  ;;  %v755_v60 = vpop.f32.mrf.mxu0 }
  0xec   : > { %v2256_v11 = vadd.f32 %v931_v56, %v843_v53  ;;  %v844_v0 = vpop.f32.mrf.mxu1  ;;  %v1787_v3 = vpop.eup %1786 }
  0xed   : > { %v1167_v12 = vsel %vm1103_vm3, %v1787_v3, 0.0  ;;  %v845_v17 = vadd.f32 %v844_v0, %v755_v60 }
  0xee   : > { %1788 = vrcp.f32 %v2256_v11  ;;  %vm1104_vm4 = vcmp.gt.f32.partialorder %v2256_v11, 0.0 }
  0xef   : > { %1213 = vperm.xlu1 %1778, %v1167_v12  }
  0xf1   : > { %v2263_v21 = vpop.f32.mrf.mxu3 }
  0xf3   : > { %v933_v32 = vpop.f32.mrf.mxu2  ;;  %v758_v24 = vpop.f32.mrf.mxu0 }
  0xf4   : > { %v2265_v13 = vadd.f32 %v933_v32, %v845_v17  ;;  %v847_v27 = vpop.f32.mrf.mxu1  ;;  %v1789_v28 = vpop.eup %1788 }
  0xf5   : > { %v1168_v29 = vsel %vm1104_vm4, %v1789_v28, 0.0  ;;  %v848_v30 = vadd.f32 %v847_v27, %v758_v24 }
  0xf6   : > { %797 = vmatmul.bf16.gmra.mxu0 %v495_v22  ;;  %995 = vmatmul.bf16.gmra.mxu3 %v509_v23  ;;  %1790 = vrcp.f32 %v2265_v13  ;;  %vm1105_vm5 = vcmp.gt.f32.partialorder %v2265_v13, 0.0 }
  0xf7   : > { %886 = vmatmul.bf16.gmra.mxu1 %v496_v43  ;;  %1218 = vperm.xlu2 %1779, %v1168_v29  }
  0xf8   : > { %975 = vmatmul.bf16.gmra.mxu2 %v497_v26 }
  0xf9   : > { %v2269_v16 = vpop.f32.mrf.mxu3 }
  0xfb   : > { %v936_v33 = vpop.f32.mrf.mxu2  ;;  %v760_v35 = vpop.f32.mrf.mxu0 }
  0xfc   : > { %v2271_v34 = vadd.f32 %v936_v33, %v848_v30  ;;  %v849_v31 = vpop.f32.mrf.mxu1  ;;  %v1791_v36 = vpop.eup %1790 }
  0xfd   : > { %v1169_v37 = vsel %vm1105_vm5, %v1791_v36, 0.0  ;;  %v850_v38 = vadd.f32 %v849_v31, %v760_v35 }
  0xfe   : > { %1792 = vrcp.f32 %v2271_v34  ;;  %vm1106_vm6 = vcmp.gt.f32.partialorder %v2271_v34, 0.0 }
  0xff   : > { %1223 = vperm.xlu2 %1779, %v1169_v37  }
 0x101   : > { %v2275_v39 = vpop.f32.mrf.mxu3 }
 0x103   : > { %v938_v40 = vpop.f32.mrf.mxu2  ;;  %v763_v2 = vpop.f32.mrf.mxu0 }
 0x104   : > { %v2277_v42 = vadd.f32 %v938_v40, %v850_v38  ;;  %v852_v45 = vpop.f32.mrf.mxu1  ;;  %v1793_v47 = vpop.eup %1792 }
 0x105   : > { %v1170_v48 = vsel %vm1106_vm6, %v1793_v47, 0.0  ;;  %v853_v5 = vadd.f32 %v852_v45, %v763_v2 }
 0x106   : > { %1228 = vperm.xlu0 %1777, %v1170_v48   ;;  %1794 = vrcp.f32 %v2277_v42  ;;  %vm1107_vm7 = vcmp.gt.f32.partialorder %v2277_v42, 0.0 }
 0x109   : > { %v2281_v50 = vpop.f32.mrf.mxu3 }
 0x10b   : > { %v941_v51 = vpop.f32.mrf.mxu2  ;;  %v765_v53 = vpop.f32.mrf.mxu0 }
 0x10c   : > { %v2283_v52 = vadd.f32 %v941_v51, %v853_v5  ;;  %v854_v54 = vpop.f32.mrf.mxu1  ;;  %v1795_v55 = vpop.eup %1794 }
 0x10d   : > { %v1171_v56 = vsel %vm1107_vm7, %v1795_v55, 0.0  ;;  %v855_v57 = vadd.f32 %v854_v54, %v765_v53 }
 0x10e   : > { %1233 = vperm.xlu1 %1778, %v1171_v56   ;;  %1796 = vrcp.f32 %v2283_v52  ;;  %vm1108_vm8 = vcmp.gt.f32.partialorder %v2283_v52, 0.0 }
 0x111   : > { %v2287_v58 = vpop.f32.mrf.mxu3 }
 0x113   : > { %v943_v59 = vpop.f32.mrf.mxu2  ;;  %v768_v61 = vpop.f32.mrf.mxu0 }
 0x114   : > { %v2289_v60 = vadd.f32 %v943_v59, %v855_v57  ;;  %v857_v63 = vpop.f32.mrf.mxu1  ;;  %v1797_v14 = vpop.eup %1796 }
 0x115   : > { %v1172_v0 = vsel %vm1108_vm8, %v1797_v14, 0.0  ;;  %v858_v3 = vadd.f32 %v857_v63, %v768_v61 }
 0x116   : > { %1238 = vperm.xlu2 %1779, %v1172_v0   ;;  %1798 = vrcp.f32 %v2289_v60  ;;  %vm1109_vm9 = vcmp.gt.f32.partialorder %v2289_v60, 0.0 }
 0x119   : > { %v2293_v4 = vpop.f32.mrf.mxu3 }
 0x11b   : > { %v946_v6 = vpop.f32.mrf.mxu2  ;;  %v770_v9 = vpop.f32.mrf.mxu0 }
 0x11c   : > { %v2295_v7 = vadd.f32 %v946_v6, %v858_v3  ;;  %v859_v19 = vpop.f32.mrf.mxu1  ;;  %v1799_v12 = vpop.eup %1798 }
 0x11d   : > { %v1173_v15 = vsel %vm1109_vm9, %v1799_v12, 0.0  ;;  %v860_v18 = vadd.f32 %v859_v19, %v770_v9 }
 0x11e   : > { %1243 = vperm.xlu0 %1777, %v1173_v15   ;;  %1800 = vrcp.f32 %v2295_v7  ;;  %vm1110_vm10 = vcmp.gt.f32.partialorder %v2295_v7, 0.0  ;;  %v893_v15 = vadd.f32 %v2281_v50, %v2206_v44  ;;  %v895_v44 = vadd.f32 %v2287_v58, %v2211_v62 }
 0x121   : > { %v2299_v20 = vpop.f32.mrf.mxu3 }
 0x123   : > { %v948_v17 = vpop.f32.mrf.mxu2  ;;  %v773_v22 = vpop.f32.mrf.mxu0 }
 0x124   : > { %v2301_v32 = vadd.f32 %v948_v17, %v860_v18  ;;  %v862_v23 = vpop.f32.mrf.mxu1  ;;  %v1801_v24 = vpop.eup %1800 }
 0x125   : > { %v1174_v43 = vsel %vm1110_vm10, %v1801_v24, 0.0  ;;  %v863_v26 = vadd.f32 %v862_v23, %v773_v22 }
 0x126   : > { %1248 = vperm.xlu1 %1778, %v1174_v43   ;;  %1802 = vrcp.f32 %v2301_v32  ;;  %vm1111_vm11 = vcmp.gt.f32.partialorder %v2301_v32, 0.0 }
 0x129   : > { %v2305_v27 = vpop.f32.mrf.mxu3 }
 0x12b   : > { %v951_v28 = vpop.f32.mrf.mxu2  ;;  %v775_v30 = vpop.f32.mrf.mxu0 }
 0x12c   : > { %v2307_v29 = vadd.f32 %v951_v28, %v863_v26  ;;  %v864_v33 = vpop.f32.mrf.mxu1  ;;  %v1803_v35 = vpop.eup %1802 }
 0x12d   : > { %v1175_v31 = vsel %vm1111_vm11, %v1803_v35, 0.0  ;;  %v865_v36 = vadd.f32 %v864_v33, %v775_v30 }
 0x12e   : > { %1253 = vperm.xlu2 %1779, %v1175_v31   ;;  %1804 = vrcp.f32 %v2307_v29  ;;  %vm1112_vm12 = vcmp.gt.f32.partialorder %v2307_v29, 0.0 }
 0x131   : > { %v904_v37 = vpop.f32.mrf.mxu3 }
 0x132   : > { %v2312_v38 = vadd.f32 %v904_v37, %v2263_v21 }
 0x133   : > { %v953_v40 = vpop.f32.mrf.mxu2  ;;  %v778_v45 = vpop.f32.mrf.mxu0 }
 0x134   : > { %v2314_v2 = vadd.f32 %v953_v40, %v865_v36  ;;  %v867_v47 = vpop.f32.mrf.mxu1  ;;  %v1805_v48 = vpop.eup %1804 }
 0x135   : > { %v1176_v5 = vsel %vm1112_vm12, %v1805_v48, 0.0  ;;  %v868_v51 = vadd.f32 %v867_v47, %v778_v45 }
 0x136   : > { %1258 = vperm.xlu0 %1777, %v1176_v5   ;;  %1806 = vrcp.f32 %v2314_v2  ;;  %vm1113_vm13 = vcmp.gt.f32.partialorder %v2314_v2, 0.0 }
 0x139   : > { %v2318_v53 = vpop.f32.mrf.mxu3 }
 0x13b   : > { %v956_v54 = vpop.f32.mrf.mxu2  ;;  %v780_v21 = vpop.f32.mrf.mxu0 }
 0x13c   : > { %v2320_v55 = vadd.f32 %v956_v54, %v868_v51  ;;  %v869_v56 = vpop.f32.mrf.mxu1  ;;  %v1807_v57 = vpop.eup %1806 }
 0x13d   : > { %v1177_v59 = vsel %vm1113_vm13, %v1807_v57, 0.0  ;;  %v870_v61 = vadd.f32 %v869_v56, %v780_v21 }
 0x13e   : > { %1263 = vperm.xlu1 %1778, %v1177_v59   ;;  %1808 = vrcp.f32 %v2320_v55  ;;  %vm1114_vm14 = vcmp.gt.f32.partialorder %v2320_v55, 0.0 }
 0x141   : > { %v2324_v63 = vpop.f32.mrf.mxu3 }
 0x143   : > { %v958_v14 = vpop.f32.mrf.mxu2  ;;  %v783_v3 = vpop.f32.mrf.mxu0 }
 0x144   : > { %v2326_v0 = vadd.f32 %v958_v14, %v870_v61  ;;  %v872_v6 = vpop.f32.mrf.mxu1  ;;  %v1809_v9 = vpop.eup %1808 }
 0x145   : > { %v1178_v19 = vsel %vm1114_vm14, %v1809_v9, 0.0  ;;  %v873_v12 = vadd.f32 %v872_v6, %v783_v3 }
 0x146   : > { %1268 = vperm.xlu2 %1779, %v1178_v19   ;;  %1810 = vrcp.f32 %v2326_v0  ;;  %vm1115_vm15 = vcmp.gt.f32.partialorder %v2326_v0, 0.0 }
 0x149   : > { %v981_v18 = vpop.f32.mrf.mxu3  ;;  %v1199_v23 = vpop.permute.xlu0 %1198 }
 0x14a   : > { %v2333_v22 = vadd.f32 %v981_v18, %v893_v15  ;;  %v1356_v26 = vmul.f32 %v1199_v23, %v2208_v49 }
 0x14b   : > { %v961_v17 = vpop.f32.mrf.mxu2  ;;  %v785_v43 = vpop.f32.mrf.mxu0 }
 0x14c   : > { %v2335_v24 = vadd.f32 %v961_v17, %v873_v12  ;;  %v874_v28 = vpop.f32.mrf.mxu1  ;;  %v1811_v30 = vpop.eup %1810  ;;  %1388 = vst [vmem:[%s2338_s19] sm:$0xff] %v1356_v26  ;;  %1812 = vrcp.f32 %v2333_v22  ;;  %vm1124_vm0 = vcmp.gt.f32.partialorder %v2333_v22, 0.0 }
 0x14d   : > { %v1179_v33 = vsel %vm1115_vm15, %v1811_v30, 0.0  ;;  %v875_v50 = vadd.f32 %v874_v28, %v785_v43 }
 0x14e   : > { %1273 = vperm.xlu0 %1777, %v1179_v33   ;;  %1814 = vrcp.f32 %v2335_v24  ;;  %vm1116_vm1 = vcmp.gt.f32.partialorder %v2335_v24, 0.0 }
 0x151   : > { %v983_v49 = vpop.f32.mrf.mxu3  ;;  %v1219_v36 = vpop.permute.xlu2 %1218 }
 0x152   : > { %v2346_v31 = vadd.f32 %v983_v49, %v895_v44  ;;  %v1360_v45 = vmul.f32 %v1219_v36, %v2256_v11  ;;  %v1204_v47 = vpop.permute.xlu0 %1203  ;;  %v1813_v48 = vpop.eup %1812 }
 0x153   : > { %v963_v35 = vpop.f32.mrf.mxu2  ;;  %v788_v40 = vpop.f32.mrf.mxu0  ;;  %v1357_v51 = vmul.f32 %v1204_v47, %v2213_v1  ;;  %v1188_v58 = vsel %vm1124_vm0, %v1813_v48, 0.0  ;;  %v898_v1 = vadd.f32 %v2293_v4, %v2229_v10 }
 0x154   : > { %v2348_v37 = vadd.f32 %v963_v35, %v875_v50  ;;  %v877_v5 = vpop.f32.mrf.mxu1  ;;  %v1815_v62 = vpop.eup %1814  ;;  %1392 = vst [vmem:[%s2338_s19 + $0x20] sm:$0xff] %v1360_v45  ;;  %1816 = vrcp.f32 %v2346_v31  ;;  %vm1125_vm2 = vcmp.gt.f32.partialorder %v2346_v31, 0.0  ;;  %v903_v35 = vadd.f32 %v2305_v27, %v2249_v8 }
 0x155   : > { %1389 = vst [vmem:[%s2338_s19 + $0x8] sm:$0xff] %v1357_v51  ;;  %v1180_v54 = vsel %vm1116_vm1, %v1815_v62, 0.0  ;;  %v878_v21 = vadd.f32 %v877_v5, %v788_v40 }
 0x156   : > { %1278 = vperm.xlu1 %1778, %v1180_v54   ;;  %1318 = vperm.xlu0 %1777, %v1188_v58   ;;  %1818 = vrcp.f32 %v2348_v37  ;;  %vm1117_vm3 = vcmp.gt.f32.partialorder %v2348_v37, 0.0 }
 0x159   : > { %v986_v11 = vpop.f32.mrf.mxu3  ;;  %v1224_v59 = vpop.permute.xlu2 %1223 }
 0x15a   : > { %v2360_v57 = vadd.f32 %v986_v11, %v898_v1  ;;  %v1361_v3 = vmul.f32 %v1224_v59, %v2265_v13  ;;  %v1209_v6 = vpop.permute.xlu1 %1208  ;;  %v1817_v9 = vpop.eup %1816  ;;  %v900_v13 = vadd.f32 %v2299_v20, %v2243_v41 }
 0x15b   : > { %v966_v56 = vpop.f32.mrf.mxu2  ;;  %v790_v14 = vpop.f32.mrf.mxu0  ;;  %v1358_v12 = vmul.f32 %v1209_v6, %v2236_v25  ;;  %v1189_v10 = vsel %vm1125_vm2, %v1817_v9, 0.0 }
 0x15c   : > { %v2362_v61 = vadd.f32 %v966_v56, %v878_v21  ;;  %v879_v19 = vpop.f32.mrf.mxu1  ;;  %v1819_v15 = vpop.eup %1818  ;;  %1393 = vst [vmem:[%s2338_s19 + $0x28] sm:$0xff] %v1361_v3  ;;  %1820 = vrcp.f32 %v2360_v57  ;;  %vm1126_vm4 = vcmp.gt.f32.partialorder %v2360_v57, 0.0 }
 0x15d   : > { %1390 = vst [vmem:[%s2338_s19 + $0x10] sm:$0xff] %v1358_v12  ;;  %v1181_v4 = vsel %vm1117_vm3, %v1819_v15, 0.0  ;;  %v880_v25 = vadd.f32 %v879_v19, %v790_v14 }
 0x15e   : > { %1283 = vperm.xlu2 %1779, %v1181_v4   ;;  %1323 = vperm.xlu1 %1778, %v1189_v10   ;;  %1822 = vrcp.f32 %v2362_v61  ;;  %vm1118_vm5 = vcmp.gt.f32.partialorder %v2362_v61, 0.0 }
 0x161   : > { %v988_v18 = vpop.f32.mrf.mxu3 }
 0x162   : > { %v2374_v23 = vadd.f32 %v988_v18, %v900_v13  ;;  %v1214_v28 = vpop.permute.xlu1 %1213  ;;  %v1821_v30 = vpop.eup %1820 }
 0x163   : > { %v968_v17 = vpop.f32.mrf.mxu2  ;;  %v793_v26 = vpop.f32.mrf.mxu0  ;;  %v1359_v44 = vmul.f32 %v1214_v28, %v2245_v46  ;;  %v1190_v49 = vsel %vm1126_vm4, %v1821_v30, 0.0 }
 0x164   : > { %v2376_v43 = vadd.f32 %v968_v17, %v880_v25  ;;  %v882_v33 = vpop.f32.mrf.mxu1  ;;  %v1823_v50 = vpop.eup %1822  ;;  %1824 = vrcp.f32 %v2374_v23  ;;  %vm1127_vm6 = vcmp.gt.f32.partialorder %v2374_v23, 0.0 }
 0x165   : > { %1391 = vst [vmem:[%s2338_s19 + $0x18] sm:$0xff] %v1359_v44  ;;  %v1182_v41 = vsel %vm1118_vm5, %v1823_v50, 0.0  ;;  %v883_v20 = vadd.f32 %v882_v33, %v793_v26 }
 0x166   : > { %1328 = vperm.xlu2 %1779, %v1190_v49   ;;  %1288 = vperm.xlu0 %1777, %v1182_v41   ;;  %1826 = vrcp.f32 %v2376_v43  ;;  %vm1119_vm7 = vcmp.gt.f32.partialorder %v2376_v43, 0.0 }
 0x169   : > { %v991_v36 = vpop.f32.mrf.mxu3 }
 0x16a   : > { %v2386_v40 = vadd.f32 %v991_v36, %v903_v35  ;;  %v1825_v48 = vpop.eup %1824 }
 0x16b   : > { %v971_v46 = vpop.f32.mrf.mxu2  ;;  %v795_v47 = vpop.f32.mrf.mxu0  ;;  %v1191_v62 = vsel %vm1127_vm6, %v1825_v48, 0.0 }
 0x16c   : > { %v2388_v45 = vadd.f32 %v971_v46, %v883_v20  ;;  %v884_v5 = vpop.f32.mrf.mxu1  ;;  %v1827_v51 = vpop.eup %1826  ;;  %1828 = vrcp.f32 %v2386_v40  ;;  %vm1128_vm8 = vcmp.gt.f32.partialorder %v2386_v40, 0.0 }
 0x16d   : > { %v1183_v58 = vsel %vm1119_vm7, %v1827_v51, 0.0  ;;  %v885_v8 = vadd.f32 %v884_v5, %v795_v47 }
 0x16e   : > { %1293 = vperm.xlu1 %1778, %v1183_v58   ;;  %1333 = vperm.xlu0 %1777, %v1191_v62   ;;  %1830 = vrcp.f32 %v2388_v45  ;;  %vm1120_vm9 = vcmp.gt.f32.partialorder %v2388_v45, 0.0 }
 0x170   : > { %v1239_v54 = vpop.permute.xlu2 %1238 }
 0x171   : > { %v993_v27 = vpop.f32.mrf.mxu3  ;;  %v1364_v1 = vmul.f32 %v1239_v54, %v2283_v52  ;;  %v908_v52 = vadd.f32 %v2318_v53, %v2269_v16  ;;  %v910_v16 = vadd.f32 %v2324_v63, %v2275_v39 }
 0x172   : > { %v1829_v56 = vpop.eup %1828  ;;  %v2422_v35 = vadd.f32 %v993_v27, %v2312_v38 }
 0x173   : > { %v973_v21 = vpop.f32.mrf.mxu2  ;;  %v798_v59 = vpop.f32.mrf.mxu0  ;;  %1396 = vst [vmem:[%s2338_s19 + $0x40] sm:$0xff] %v1364_v1  ;;  %v1192_v6 = vsel %vm1128_vm8, %v1829_v56, 0.0 }
 0x174   : > { %v2395_v11 = vadd.f32 %v973_v21, %v885_v8  ;;  %v887_v14 = vpop.f32.mrf.mxu1  ;;  %v1831_v3 = vpop.eup %1830  ;;  %vm1129_vm15 = vcmp.gt.f32.partialorder %v2422_v35, 0.0 }
 0x175   : > { %v1184_v9 = vsel %vm1120_vm9, %v1831_v3, 0.0  ;;  %v888_v19 = vadd.f32 %v887_v14, %v798_v59 }
 0x176   : > { %1298 = vperm.xlu2 %1779, %v1184_v9   ;;  %1338 = vperm.xlu1 %1778, %v1192_v6   ;;  %1832 = vrcp.f32 %v2395_v11  ;;  %vm1121_vm10 = vcmp.gt.f32.partialorder %v2395_v11, 0.0 }
 0x178   : > { %v1229_v15 = vpop.permute.xlu0 %1228 }
 0x179   : > { %v996_v12 = vpop.f32.mrf.mxu3  ;;  %v1362_v13 = vmul.f32 %v1229_v15, %v2271_v34 }
 0x17a   : > { %v2403_v4 = vadd.f32 %v996_v12, %v908_v52 }
 0x17b   : > { %v976_v10 = vpop.f32.mrf.mxu2  ;;  %1394 = vst [vmem:[%s2338_s19 + $0x30] sm:$0xff] %v1362_v13  ;;  %v800_v17 = vpop.f32.mrf.mxu0 }
 0x17c   : > { %v2406_v25 = vadd.f32 %v976_v10, %v888_v19  ;;  %v1833_v18 = vpop.eup %1832  ;;  %v889_v26 = vpop.f32.mrf.mxu1  ;;  %1834 = vrcp.f32 %v2403_v4  ;;  %vm1130_vm11 = vcmp.gt.f32.partialorder %v2403_v4, 0.0 }
 0x17d   : > { %v1185_v28 = vsel %vm1121_vm10, %v1833_v18, 0.0  ;;  %v890_v53 = vadd.f32 %v889_v26, %v800_v17 }
 0x17e   : > { %1303 = vperm.xlu0 %1777, %v1185_v28   ;;  %1836 = vrcp.f32 %v2406_v25  ;;  %vm1122_vm12 = vcmp.gt.f32.partialorder %v2406_v25, 0.0 }
 0x180   : > { %v1234_v30 = vpop.permute.xlu1 %1233 }
 0x181   : > { %v998_v34 = vpop.f32.mrf.mxu3  ;;  %v1363_v50 = vmul.f32 %v1234_v30, %v2277_v42 }
 0x182   : > { %v2414_v44 = vadd.f32 %v998_v34, %v910_v16  ;;  %v1835_v41 = vpop.eup %1834 }
 0x183   : > { %v978_v33 = vpop.f32.mrf.mxu2  ;;  %1395 = vst [vmem:[%s2338_s19 + $0x38] sm:$0xff] %v1363_v50  ;;  %v1194_v39 = vsel %vm1130_vm11, %v1835_v41, 0.0 }
 0x184   : > { %v2417_v49 = vadd.f32 %v978_v33, %v890_v53  ;;  %v1837_v20 = vpop.eup %1836  ;;  %1838 = vrcp.f32 %v2414_v44  ;;  %vm1131_vm13 = vcmp.gt.f32.partialorder %v2414_v44, 0.0 }
 0x185   : > { %v1186_v63 = vsel %vm1122_vm12, %v1837_v20, 0.0 }
 0x186   : > { %1308 = vperm.xlu1 %1778, %v1186_v63   ;;  %1348 = vperm.xlu0 %1777, %v1194_v39   ;;  %1840 = vrcp.f32 %v2417_v49  ;;  %vm1123_vm14 = vcmp.gt.f32.partialorder %v2417_v49, 0.0 }
 0x187   : > { %1842 = vrcp.f32 %v2422_v35 }
 0x188   : > { %v1254_v42 = vpop.permute.xlu2 %1253 }
 0x189   : > { %v1367_v36 = vmul.f32 %v1254_v42, %v2301_v32 }
 0x18a   : > { %v1839_v46 = vpop.eup %1838 }
 0x18b   : > { %1399 = vst [vmem:[%s2338_s19 + $0x58] sm:$0xff] %v1367_v36  ;;  %v1195_v47 = vsel %vm1131_vm13, %v1839_v46, 0.0 }
 0x18c   : > { %v1841_v38 = vpop.eup %1840 }
 0x18d   : > { %v1187_v48 = vsel %vm1123_vm14, %v1841_v38, 0.0  ;;  %v1843_v32 = vpop.eup %1842 }
 0x18e   : > { %1313 = vperm.xlu2 %1779, %v1187_v48   ;;  %1353 = vperm.xlu1 %1778, %v1195_v47   ;;  %v1193_v62 = vsel %vm1129_vm15, %v1843_v32, 0.0 }
 0x190   : > { %v1244_v5 = vpop.permute.xlu0 %1243 }
 0x191   : > { %v1365_v51 = vmul.f32 %v1244_v5, %v2289_v60 }
 0x193   : > { %1397 = vst [vmem:[%s2338_s19 + $0x48] sm:$0xff] %v1365_v51 }
 0x196   : > { %1343 = vperm.xlu2 %1779, %v1193_v62  }
 0x198   : > { %v1249_v58 = vpop.permute.xlu1 %1248 }
 0x199   : > { %v1366_v8 = vmul.f32 %v1249_v58, %v2295_v7 }
 0x19b   : > { %1398 = vst [vmem:[%s2338_s19 + $0x50] sm:$0xff] %v1366_v8 }
 0x1a0   : > { %v1269_v27 = vpop.permute.xlu2 %1268 }
 0x1a1   : > { %v1370_v54 = vmul.f32 %v1269_v27, %v2320_v55 }
 0x1a3   : > { %1402 = vst [vmem:[%s2338_s19 + $0x70] sm:$0xff] %v1370_v54 }
 0x1a8   : > { %v1259_v21 = vpop.permute.xlu0 %1258 }
 0x1a9   : > { %v1368_v60 = vmul.f32 %v1259_v21, %v2307_v29 }
 0x1ab   : > { %1400 = vst [vmem:[%s2338_s19 + $0x60] sm:$0xff] %v1368_v60 }
 0x1b0   : > { %v1264_v1 = vpop.permute.xlu1 %1263 }
 0x1b1   : > { %v1369_v56 = vmul.f32 %v1264_v1, %v2314_v2 }
 0x1b3   : > { %1401 = vst [vmem:[%s2338_s19 + $0x68] sm:$0xff] %v1369_v56 }
 0x1b8   : > { %v1284_v59 = vpop.permute.xlu2 %1283 }
 0x1b9   : > { %v1373_v7 = vmul.f32 %v1284_v59, %v2348_v37 }
 0x1bb   : > { %1405 = vst [vmem:[%s2338_s19 + $0x88] sm:$0xff] %v1373_v7 }
 0x1c0   : > { %v1329_v14 = vpop.permute.xlu2 %1328  ;;  %v1274_v3 = vpop.permute.xlu0 %1273 }
 0x1c1   : > { %v1382_v55 = vmul.f32 %v1329_v14, %v2360_v57  ;;  %v1371_v6 = vmul.f32 %v1274_v3, %v2326_v0 }
 0x1c3   : > { %1414 = vst [vmem:[%s2338_s19 + $0xd0] sm:$0xff] %v1382_v55 }
 0x1c4   : > { %1403 = vst [vmem:[%s2338_s19 + $0x78] sm:$0xff] %v1371_v6 }
 0x1c8   : > { %v1279_v29 = vpop.permute.xlu1 %1278  ;;  %v1319_v9 = vpop.permute.xlu0 %1318 }
 0x1c9   : > { %v1372_v2 = vmul.f32 %v1279_v29, %v2335_v24  ;;  %v1380_v19 = vmul.f32 %v1319_v9, %v2333_v22 }
 0x1cb   : > { %1404 = vst [vmem:[%s2338_s19 + $0x80] sm:$0xff] %v1372_v2 }
 0x1cc   : > { %1412 = vst [vmem:[%s2338_s19 + $0xc0] sm:$0xff] %v1380_v19 }
 0x1d0   : > { %v1299_v37 = vpop.permute.xlu2 %1298  ;;  %v1324_v52 = vpop.permute.xlu1 %1323 }
 0x1d1   : > { %v1376_v12 = vmul.f32 %v1299_v37, %v2388_v45  ;;  %v1381_v57 = vmul.f32 %v1324_v52, %v2346_v31 }
 0x1d3   : > { %1408 = vst [vmem:[%s2338_s19 + $0xa0] sm:$0xff] %v1376_v12 }
 0x1d4   : > { %1413 = vst [vmem:[%s2338_s19 + $0xc8] sm:$0xff] %v1381_v57 }
 0x1d8   : > { %v1289_v0 = vpop.permute.xlu0 %1288 }
 0x1d9   : > { %v1374_v15 = vmul.f32 %v1289_v0, %v2362_v61 }
 0x1db   : > { %1406 = vst [vmem:[%s2338_s19 + $0x90] sm:$0xff] %v1374_v15 }
 0x1e0   : > { %v1294_v24 = vpop.permute.xlu1 %1293  ;;  %v1334_v22 = vpop.permute.xlu0 %1333 }
 0x1e1   : > { %v1375_v10 = vmul.f32 %v1294_v24, %v2376_v43  ;;  %v1383_v13 = vmul.f32 %v1334_v22, %v2374_v23 }
 0x1e3   : > { %1407 = vst [vmem:[%s2338_s19 + $0x98] sm:$0xff] %v1375_v10 }
 0x1e4   : > { %1415 = vst [vmem:[%s2338_s19 + $0xd8] sm:$0xff] %v1383_v13 }
 0x1e8   : > { %v1314_v31 = vpop.permute.xlu2 %1313  ;;  %v1339_v45 = vpop.permute.xlu1 %1338 }
 0x1e9   : > { %v1379_v18 = vmul.f32 %v1314_v31, %v2417_v49  ;;  %v1384_v17 = vmul.f32 %v1339_v45, %v2386_v40 }
 0x1eb   : > { %1411 = vst [vmem:[%s2338_s19 + $0xb8] sm:$0xff] %v1379_v18 }
 0x1ec   : > { %1416 = vst [vmem:[%s2338_s19 + $0xe0] sm:$0xff] %v1384_v17 }
 0x1f0   : > { %v1344_v61 = vpop.permute.xlu2 %1343  ;;  %v1304_v26 = vpop.permute.xlu0 %1303 }
 0x1f1   : > { %v1385_v43 = vmul.f32 %v1344_v61, %v2422_v35  ;;  %v1377_v28 = vmul.f32 %v1304_v26, %v2395_v11 }
 0x1f3   : > { %1417 = vst [vmem:[%s2338_s19 + $0xe8] sm:$0xff] %v1385_v43 }
 0x1f4   : > { %1409 = vst [vmem:[%s2338_s19 + $0xa8] sm:$0xff] %v1377_v28 }
 0x1f8   : > { %v1309_v23 = vpop.permute.xlu1 %1308  ;;  %v1349_v16 = vpop.permute.xlu0 %1348 }
 0x1f9   : > { %v1378_v53 = vmul.f32 %v1309_v23, %v2406_v25  ;;  %v1386_v40 = vmul.f32 %v1349_v16, %v2403_v4 }
 0x1fb   : > { %1410 = vst [vmem:[%s2338_s19 + $0xb0] sm:$0xff] %v1378_v53 }
 0x1fc   : > { %1418 = vst [vmem:[%s2338_s19 + $0xf0] sm:$0xff] %v1386_v40 }
 0x200   : > { %v1354_v11 = vpop.permute.xlu1 %1353 }
 0x201   : > { %v1387_v34 = vmul.f32 %v1354_v11, %v2414_v44 }
 0x203   : > { %1419 = vst [vmem:[%s2338_s19 + $0xf8] sm:$0xff] %v1387_v34 }
 0x204   : > { %1931 = shalt.err (!%p1928_p0)
}
 0x205   : > { %s1998_s28 = smov 128   ;;  %s1999_s4 = smov 8  }
 0x206   : > { %1702 = dma.vmem_to_hbm [thread:$0]  (%p2090_p5), %s1434_s16, 4096, %s1436_s21, %s1421_s12, %s1998_s28, %s1998_s28, %s1999_s4  }
 0x207 PF: > { %s1450_s6 = sand.u32 1, %s1970_s9   ;;  %p1713_p3 = pnand %p1536_p11, %p2064_p6 }
 0x208   : > { %s1451_s17 = scalar_lea.sflag [#allocation4], %s1450_s6 }
 0x209   : > { %p1714_p7 = pneg %p1713_p3 }
 0x20b   : > { %1965 = dma.done.wait (%p1714_p7), %s1451_s17, 4096  }
 0x20c   : > { %1967 = vsyncadd (%p1714_p7), %s1451_s17, 4294963200  ;;  %s19_s14 = sadd.s32 1, %s1990_s14   ;;  %s2525_s9 = smov %s1974_s10 }
 0x20d   : > { %p16_p9 = scmp.ge.s32.totalorder %s19_s14, 4   ;;  %s2526_s10 = smov %s1978_s11 }
 0x20e   : > { %s2527_s11 = smov %s2099_s7  ;;  %s2528_s12 = smov %s1986_s13 }
 0x20f   : > { %s2529_s13 = smov %s2531_s29  ;;  %18 = sbr.rel (!%p16_p9) target bundleno = 7 (0x7), region = 86 }
 0x214   :  { %1457 = vsyncpa [#allocation3], 1 }
 0x215   :  { %1459 = vsyncpa [#allocation3 + $0x1], 1 }
 0x216   :  { %1460 = vsyncpa [#allocation6], 1 }
 0x217   :  { %1461 = vsyncpa [#allocation4], 1 }
 0x218   :  { %1463 = vsyncpa [#allocation4 + $0x1], 1 }

</bundles_post_ra>
